<compile_context>
chip_gen: v7x
topology: tpu7x:2x2x1
jax: 0.10.0
libtpu: 0.0.40
codegen_flags: <defaults>
</compile_context>

<pallas_src>
import jax
import jax.numpy as jnp
from jax.experimental import pallas as pl
from jax.experimental.pallas import tpu as pltpu


def _round_up(x, m):
    return ((x + m - 1) // m) * m


def _round_down(x, m):
    return (x // m) * m


def _vmem_capacity_bytes():
    """Physical VMEM per TensorCore; conservative (v7x, 64 MiB) fallback."""
    try:
        info = pltpu.get_tpu_info()
        for attr in ("vmem_capacity_bytes", "vmem_size_bytes", "vmem_bytes"):
            v = getattr(info, attr, None)
            if v:
                return int(v)
    except Exception:
        pass
    return 64 << 20


def _zero_conv_kernel_vpu(x_ref, w_ref, b_ref, o_ref):
    # x_ref: (nb, C_in, t), w_ref: (C_out, C_in), b_ref: (C_out, 1),
    # o_ref: (nb, C_out, t).  Tiny channel counts -> unrolled VPU FMA chain,
    # no MXU push/pop on the critical path.
    x = x_ref[...].astype(jnp.float32)
    w = w_ref[...].astype(jnp.float32)
    b = b_ref[...].astype(jnp.float32)
    c_in = x_ref.shape[1]
    acc = w[None, :, 0:1] * x[:, 0:1, :] + b[None]          # (nb, C_out, t)
    for k in range(1, c_in):                                 # static unroll
        acc = acc + w[None, :, k:k + 1] * x[:, k:k + 1, :]
    o_ref[...] = acc.astype(o_ref.dtype)


def _zero_conv_kernel_mxu(x_ref, w_ref, b_ref, o_ref):
    # General/large-channel path: (C_out, C_in) @ (C_in, t) on the MXU,
    # unrolled over the (small) batch block.
    w = w_ref[...]
    b = b_ref[...].astype(jnp.float32)
    for i in range(x_ref.shape[0]):                          # nb is small here
        acc = jnp.dot(w, x_ref[i], preferred_element_type=jnp.float32)
        o_ref[i] = (acc + b).astype(o_ref.dtype)


def zero_conv2d(x_nchw, weight, bias):
    """1x1 conv forward (nn.Conv2d(in_ch, out_ch, kernel_size=1, padding=0)).

    x_nchw : [N, C_in, H, W]
    weight : [C_out, C_in, 1, 1]   (PyTorch convention)
    bias   : [C_out]
    returns [N, C_out, H, W]
    """
    N, C_in, H, W = x_nchw.shape
    C_out = weight.shape[0]
    HW = H * W
    itemsize = jnp.dtype(x_nchw.dtype).itemsize
    w_itemsize = jnp.dtype(weight.dtype).itemsize

    # Free reshapes only — no NCHW<->NHWC transposes, no padding, no slicing.
    x = x_nchw.reshape(N, C_in, HW)
    w = weight.reshape(C_out, C_in)
    b = bias.reshape(C_out, 1)

    # ---- per-generation VMEM budgets ---------------------------------------
    phys_vmem = _vmem_capacity_bytes()
    if phys_vmem <= (64 << 20):          # v7x: 64 MiB physical VMEM
        tile_budget = 20 << 20
        vmem_cap = 44 << 20
    else:                                # v5e / v6e: 128 MiB physical VMEM
        tile_budget = 48 << 20
        vmem_cap = 96 << 20

    # Resident weight/bias (x2 for pipeline buffers), padded to layout tiles.
    wb_bytes = 2 * (_round_up(C_out, 8) * _round_up(C_in, 128)
                    + _round_up(C_out, 8) * 128) * w_itemsize
    tile_budget = max(tile_budget - wb_bytes, 2 << 20)

    # ---- spatial tile: as large as the budget allows, lane-aligned ----------
    lane = 128
    bytes_per_col = (C_in + C_out) * itemsize            # x + y column / image
    max_t_hw = max(lane, _round_down(tile_budget // (2 * bytes_per_col), lane))
    if _round_up(HW, lane) <= max_t_hw:
        t_hw = HW            # whole image in one tile (full-dim block)
        n_sp = 1
    else:
        t_hw = max_t_hw      # multiple of 128; partial edge block is masked
        n_sp = pl.cdiv(HW, t_hw)

    small_channels = C_in < 16
    kernel = _zero_conv_kernel_vpu if small_channels else _zero_conv_kernel_mxu

    # ---- batch block: fatten grid steps when a single spatial tile is tiny --
    nb = 1
    if n_sp == 1 and N > 1:
        step_payload = max(t_hw * bytes_per_col, 1)
        nb = max(1, min(N, (4 << 20) // step_payload))            # ~4 MiB/step
        nb = min(nb, max(1, tile_budget // (2 * step_payload)))   # VMEM budget
        if not small_channels:
            nb = min(nb, 8)               # keep MXU-path unroll small
        # keep >=4 grid steps (v7x megacore) when steps would stay >= ~1 MiB
        nb_mc = max(1, N // 4)
        if nb_mc * step_payload >= (1 << 20):
            nb = min(nb, nb_mc)

    grid = (pl.cdiv(N, nb), n_sp)

    # ---- scoped VMEM: tiles (already double-buffered) + weights + headroom --
    t_hw_pad = _round_up(t_hw, lane)
    tiles_bytes = 2 * nb * (C_in + C_out) * t_hw_pad * itemsize
    needed = tiles_bytes + wb_bytes + (2 << 20)
    vmem_limit = None
    if needed > (12 << 20):               # would crowd v5e's 16 MiB default
        vmem_limit = min(needed + (4 << 20), vmem_cap)

    cost = pl.CostEstimate(
        flops=2 * N * HW * C_in * C_out,
        transcendentals=0,
        bytes_accessed=(N * (C_in + C_out) * HW) * itemsize
                       + (C_out * C_in + C_out) * w_itemsize,
    )

    y = pl.pallas_call(
        kernel,
        out_shape=jax.ShapeDtypeStruct((N, C_out, HW), x_nchw.dtype),
        grid_spec=pltpu.PrefetchScalarGridSpec(
            num_scalar_prefetch=0,
            grid=grid,
            in_specs=[
                # x block: nb images' channels x a lane-dense spatial tile.
                pl.BlockSpec((nb, C_in, t_hw), lambda ib, js: (ib, 0, js)),
                # Weight and bias stay resident across the whole grid.
                pl.BlockSpec((C_out, C_in), lambda ib, js: (0, 0)),
                pl.BlockSpec((C_out, 1), lambda ib, js: (0, 0)),
            ],
            out_specs=pl.BlockSpec((nb, C_out, t_hw), lambda ib, js: (ib, 0, js)),
        ),
        compiler_params=pltpu.CompilerParams(
            dimension_semantics=("parallel", "parallel"),
            vmem_limit_bytes=vmem_limit,
        ),
        cost_estimate=cost,
    )(x, w, b)

    return y.reshape(N, C_out, H, W)


if __name__ == "__main__":
    key = jax.random.PRNGKey(0)

    # --- ZeroConv2d(in_ch=4, out_ch=8), zero-initialized weight/bias ---------
    in_ch, out_ch = 4, 8
    batch, spatial = 2, 16

    kx, kw, kb = jax.random.split(key, 3)
    x = jax.random.normal(kx, (batch, in_ch, spatial, spatial), dtype=jnp.float32)

    weight0 = jnp.zeros((out_ch, in_ch, 1, 1), dtype=jnp.float32)
    bias0 = jnp.zeros((out_ch,), dtype=jnp.float32)

    y = jax.block_until_ready(zero_conv2d(x, weight0, bias0))
    assert y.shape == (batch, out_ch, spatial, spatial)
    assert jnp.allclose(y, jnp.zeros_like(y)), "ZeroConv2d output must be zero"

    # --- Numerical check of the 1x1-conv math with non-zero params ----------
    weight_r = jax.random.normal(kw, (out_ch, in_ch, 1, 1), dtype=jnp.float32)
    bias_r = jax.random.normal(kb, (out_ch,), dtype=jnp.float32)
    y_r = jax.block_until_ready(zero_conv2d(x, weight_r, bias_r))
    ref = (jnp.einsum("oc,nchw->nohw", weight_r.reshape(out_ch, in_ch), x)
           + bias_r.reshape(1, out_ch, 1, 1))
    assert jnp.allclose(y_r, ref, atol=1e-5, rtol=1e-5), "1x1 conv mismatch"

    # --- Non-128-divisible spatial size (no wrapper pad/slice needed) -------
    x_odd = jax.random.normal(kx, (batch, in_ch, 10, 10), dtype=jnp.float32)
    y_odd = jax.block_until_ready(zero_conv2d(x_odd, weight_r, bias_r))
    ref_odd = (jnp.einsum("oc,nchw->nohw", weight_r.reshape(out_ch, in_ch), x_odd)
               + bias_r.reshape(1, out_ch, 1, 1))
    assert jnp.allclose(y_odd, ref_odd, atol=1e-5, rtol=1e-5), "odd-size mismatch"

    # --- Wider channels exercise the MXU path -------------------------------
    in_w, out_w = 32, 32
    xw = jax.random.normal(kx, (batch, in_w, 8, 8), dtype=jnp.float32)
    ww = jax.random.normal(kw, (out_w, in_w, 1, 1), dtype=jnp.float32)
    bw = jax.random.normal(kb, (out_w,), dtype=jnp.float32)
    y_w = jax.block_until_ready(zero_conv2d(xw, ww, bw))
    ref_w = (jnp.einsum("oc,nchw->nohw", ww.reshape(out_w, in_w), xw)
             + bw.reshape(1, out_w, 1, 1))
    assert jnp.allclose(y_w, ref_w, atol=1e-4, rtol=1e-4), "MXU path mismatch"

    print("KERNEL_OK")
</pallas_src>

<mosaic_0001>
module attributes {stable_mosaic.version = 11 : i64} {
  func.func @_zero_conv_kernel_vpu(%arg0: i32, %arg1: i32, %arg2: memref<2x4x256xf32, #tpu.memory_space<vmem>>, %arg3: memref<8x4xf32, #tpu.memory_space<vmem>>, %arg4: memref<8x1xf32, #tpu.memory_space<vmem>>, %arg5: memref<2x8x256xf32, #tpu.memory_space<vmem>>) attributes {dimension_semantics = [#tpu.dimension_semantics<parallel>, #tpu.dimension_semantics<parallel>], iteration_bounds = array<i64: 1, 1>, scalar_prefetch = 0 : i64, scratch_operands = 0 : i64, tpu.core_type = #tpu.core_type<tc>, window_params = [{transform_indices = @transform_0, window_bounds = array<i64: 2, 4, 256>}, {pipeline_mode = #tpu.pipeline_mode<synchronous>, transform_indices = @transform_1, window_bounds = array<i64: 8, 4>}, {pipeline_mode = #tpu.pipeline_mode<synchronous>, transform_indices = @transform_2, window_bounds = array<i64: 8, 1>}, {transform_indices = @transform_3, window_bounds = array<i64: 2, 8, 256>}]} {
    %c0 = arith.constant 0 : index
    %c0_0 = arith.constant 0 : index
    %c0_1 = arith.constant 0 : index
    %0 = vector.load %arg2[%c0, %c0_0, %c0_1] : memref<2x4x256xf32, #tpu.memory_space<vmem>>, vector<2x4x256xf32>
    %c0_2 = arith.constant 0 : index
    %c0_3 = arith.constant 0 : index
    %1 = vector.load %arg3[%c0_2, %c0_3] : memref<8x4xf32, #tpu.memory_space<vmem>>, vector<8x4xf32>
    %c0_4 = arith.constant 0 : index
    %c0_5 = arith.constant 0 : index
    %2 = vector.load %arg4[%c0_4, %c0_5] : memref<8x1xf32, #tpu.memory_space<vmem>>, vector<8x1xf32>
    %3 = vector.extract_strided_slice %1 {offsets = [0, 0], sizes = [8, 1], strides = [1, 1]} : vector<8x4xf32> to vector<8x1xf32>
    %4 = vector.shape_cast %3 : vector<8x1xf32> to vector<1x8x1xf32>
    %5 = vector.extract_strided_slice %0 {offsets = [0, 0, 0], sizes = [2, 1, 256], strides = [1, 1, 1]} : vector<2x4x256xf32> to vector<2x1x256xf32>
    %6 = vector.broadcast %4 : vector<1x8x1xf32> to vector<2x8x256xf32>
    %7 = vector.broadcast %5 : vector<2x1x256xf32> to vector<2x8x256xf32>
    %8 = arith.mulf %6, %7 : vector<2x8x256xf32>
    %9 = vector.shape_cast %2 : vector<8x1xf32> to vector<1x8x1xf32>
    %10 = vector.broadcast %9 : vector<1x8x1xf32> to vector<2x8x256xf32>
    %11 = arith.addf %8, %10 : vector<2x8x256xf32>
    %12 = vector.extract_strided_slice %1 {offsets = [0, 1], sizes = [8, 1], strides = [1, 1]} : vector<8x4xf32> to vector<8x1xf32>
    %13 = vector.shape_cast %12 : vector<8x1xf32> to vector<1x8x1xf32>
    %14 = vector.extract_strided_slice %0 {offsets = [0, 1, 0], sizes = [2, 1, 256], strides = [1, 1, 1]} : vector<2x4x256xf32> to vector<2x1x256xf32>
    %15 = vector.broadcast %13 : vector<1x8x1xf32> to vector<2x8x256xf32>
    %16 = vector.broadcast %14 : vector<2x1x256xf32> to vector<2x8x256xf32>
    %17 = arith.mulf %15, %16 : vector<2x8x256xf32>
    %18 = arith.addf %11, %17 : vector<2x8x256xf32>
    %19 = vector.extract_strided_slice %1 {offsets = [0, 2], sizes = [8, 1], strides = [1, 1]} : vector<8x4xf32> to vector<8x1xf32>
    %20 = vector.shape_cast %19 : vector<8x1xf32> to vector<1x8x1xf32>
    %21 = vector.extract_strided_slice %0 {offsets = [0, 2, 0], sizes = [2, 1, 256], strides = [1, 1, 1]} : vector<2x4x256xf32> to vector<2x1x256xf32>
    %22 = vector.broadcast %20 : vector<1x8x1xf32> to vector<2x8x256xf32>
    %23 = vector.broadcast %21 : vector<2x1x256xf32> to vector<2x8x256xf32>
    %24 = arith.mulf %22, %23 : vector<2x8x256xf32>
    %25 = arith.addf %18, %24 : vector<2x8x256xf32>
    %26 = vector.extract_strided_slice %1 {offsets = [0, 3], sizes = [8, 1], strides = [1, 1]} : vector<8x4xf32> to vector<8x1xf32>
    %27 = vector.shape_cast %26 : vector<8x1xf32> to vector<1x8x1xf32>
    %28 = vector.extract_strided_slice %0 {offsets = [0, 3, 0], sizes = [2, 1, 256], strides = [1, 1, 1]} : vector<2x4x256xf32> to vector<2x1x256xf32>
    %29 = vector.broadcast %27 : vector<1x8x1xf32> to vector<2x8x256xf32>
    %30 = vector.broadcast %28 : vector<2x1x256xf32> to vector<2x8x256xf32>
    %31 = arith.mulf %29, %30 : vector<2x8x256xf32>
    %32 = arith.addf %25, %31 : vector<2x8x256xf32>
    %c0_6 = arith.constant 0 : index
    %c0_7 = arith.constant 0 : index
    %c0_8 = arith.constant 0 : index
    %33 = vector.load %arg5[%c0_6, %c0_7, %c0_8] : memref<2x8x256xf32, #tpu.memory_space<vmem>>, vector<2x8x256xf32>
    tpu.vector_store %arg5[%c0_6, %c0_7, %c0_8], %32 {strides = array<i32>} : memref<2x8x256xf32, #tpu.memory_space<vmem>>, vector<2x8x256xf32>,
    return
  }
  func.func @transform_0(%arg0: i32, %arg1: i32) -> (i32, i32, i32) {
    %c0_i32 = arith.constant 0 : i32
    %c0_i32_0 = arith.constant 0 : i32
    return %arg0, %c0_i32, %arg1 : i32, i32, i32
  }
  func.func @transform_1(%arg0: i32, %arg1: i32) -> (i32, i32) {
    %c0_i32 = arith.constant 0 : i32
    %c0_i32_0 = arith.constant 0 : i32
    %c0_i32_1 = arith.constant 0 : i32
    return %c0_i32, %c0_i32_0 : i32, i32
  }
  func.func @transform_2(%arg0: i32, %arg1: i32) -> (i32, i32) {
    %c0_i32 = arith.constant 0 : i32
    %c0_i32_0 = arith.constant 0 : i32
    %c0_i32_1 = arith.constant 0 : i32
    return %c0_i32, %c0_i32_0 : i32, i32
  }
  func.func @transform_3(%arg0: i32, %arg1: i32) -> (i32, i32, i32) {
    %c0_i32 = arith.constant 0 : i32
    %c0_i32_0 = arith.constant 0 : i32
    return %arg0, %c0_i32, %arg1 : i32, i32, i32
  }
}

</mosaic_0001>

<bundles_post_ra>
// kernel: tpu_custom_call.1
= control target key start
LH: loop header
LB: loop body
LE: loop exit
PB: predicated region body
PF: predicated region fallthrough
CT: control target
= control target key end

     0   :  { %v274_v1 = vmov 0   ;;  %v275_v2 = vmov 1   ;;  %s333_s0 = inlined_call_operand.vmem [shape: f32[2,4,256], index: 0, kind: input, shape index: {}]   ;;  %s334_s1 = inlined_call_operand.vmem [shape: f32[8,4], index: 1, kind: input, shape index: {}]   ;;  %s335_s2 = inlined_call_operand.vmem [shape: f32[8,1], index: 2, kind: input, shape index: {}]   ;;  %s336_s3 = inlined_call_operand.hbm [shape: f32[2,8,256], index: 3, kind: output, shape index: {}]  }
   0x1   :  { %v17_v0 = vld [vmem:[%s334_s1] sm:$0xff]  ;;  %246 = vset.pattern.permute.xlu0 %v274_v1  ;;  %247 = vset.pattern.permute.xlu1 %v275_v2 }
   0x2   :  { %8 = vsyncpa [#allocation3], 0  ;;  %21 = vperm.xlu0 %246, %v17_v0   ;;  %76 = vperm.xlu1 %247, %v17_v0   ;;  %v18_v3 = vld [vmem:[%s335_s2] sm:$0xff]  ;;  %v276_v4 = vmov 2   ;;  %v277_v5 = vmov 3   ;;  %v26_v6 = vlaneseq  ;;  %v16_v11 = vld [vmem:[%s333_s0 + $0x8] sm:$0xff] }
   0x3   :  { %v15_v10 = vld [vmem:[%s333_s0] sm:$0xff]  ;;  %s278_s0 = smov [#allocation2]  }
   0x4   :  { %v27_v7 = vshrl.u32 %v26_v6, 7  ;;  %s228_s2 = sshll.u32 %s278_s0, 4  ;;  %s229_s2 = int_to_ptr.vmem [resolvable:$true] %s228_s2 }
   0x5   :  { %s250_s19 = scalar_lea.vmem %s229_s2, 512  ;;  %p255_p1 = scmp.lt.s32.totalorder %s229_s2, %s229_s2 }
   0x6   :  { %68 = vperm.xlu0 %246, %v18_v3   ;;  %248 = vset.pattern.permute.xlu1 %v276_v4  ;;  %v28_v8 = vsub.s32 0, %v27_v7  ;;  %v32_v9 = vsub.s32 4, %v27_v7  ;;  %v81_v12 = vsub.s32 1, %v27_v7  ;;  %v85_v13 = vsub.s32 5, %v27_v7  ;;  %p251_p0 = scmp.ne.s32.totalorder %s229_s2, %s250_s19  ;;  %p256_p2 = scmp.lt.s32.totalorder %s250_s19, %s250_s19 }
   0x7   :  { %124 = vperm.xlu1 %248, %v17_v0   ;;  %v129_v14 = vsub.s32 2, %v27_v7  ;;  %v133_v15 = vsub.s32 6, %v27_v7  ;;  %v313_v16 = vsub.s32 3, %v27_v7  ;;  %v181_v17 = vsub.s32 7, %v27_v7 }
   0x8   :  { %v29_v18 = vrot.slane %v15_v10, %v28_v8  ;;  %v33_v19 = vrot.slane %v15_v10, %v32_v9  ;;  %v37_v20 = vrot.slane %v16_v11, %v28_v8  ;;  %v41_v21 = vrot.slane %v16_v11, %v32_v9  ;;  %p257_p3 = por %p256_p2, %p255_p1 }
   0x9   :  { %v82_v22 = vrot.slane %v15_v10, %v81_v12  ;;  %v86_v23 = vrot.slane %v15_v10, %v85_v13  ;;  %v90_v24 = vrot.slane %v16_v11, %v81_v12  ;;  %v94_v25 = vrot.slane %v16_v11, %v85_v13 }
   0xa   :  { %249 = vset.pattern.permute.xlu0 %v277_v5  ;;  %v130_v26 = vrot.slane %v15_v10, %v129_v14  ;;  %v134_v27 = vrot.slane %v15_v10, %v133_v15  ;;  %v138_v28 = vrot.slane %v16_v11, %v129_v14  ;;  %v142_v29 = vrot.slane %v16_v11, %v133_v15  ;;  %p258_p4 = pnand %p257_p3, %p251_p0 }
   0xb   :  { %172 = vperm.xlu0 %249, %v17_v0   ;;  %v178_v30 = vrot.slane %v15_v10, %v313_v16  ;;  %v182_v31 = vrot.slane %v15_v10, %v181_v17  ;;  %v186_v32 = vrot.slane %v16_v11, %v313_v16  ;;  %v190_v33 = vrot.slane %v16_v11, %v181_v17 }
   0xc   :  { %v49_v34 = vrot.slane %v29_v18, %v28_v8  ;;  %v53_v35 = vrot.slane %v33_v19, %v28_v8  ;;  %v57_v36 = vrot.slane %v37_v20, %v28_v8  ;;  %v61_v37 = vrot.slane %v41_v21, %v28_v8 }
   0xd   :  { %v102_v40 = vrot.slane %v82_v22, %v81_v12  ;;  %v106_v41 = vrot.slane %v86_v23, %v81_v12  ;;  %v110_v42 = vrot.slane %v90_v24, %v81_v12  ;;  %v114_v43 = vrot.slane %v94_v25, %v81_v12 }
   0xe   :  { %v150_v44 = vrot.slane %v130_v26, %v129_v14  ;;  %v154_v45 = vrot.slane %v134_v27, %v129_v14  ;;  %v158_v46 = vrot.slane %v138_v28, %v129_v14  ;;  %v162_v47 = vrot.slane %v142_v29, %v129_v14 }
   0xf   :  { %v198_v48 = vrot.slane %v178_v30, %v313_v16  ;;  %v202_v49 = vrot.slane %v182_v31, %v313_v16  ;;  %v206_v50 = vrot.slane %v186_v32, %v313_v16  ;;  %v210_v51 = vrot.slane %v190_v33, %v313_v16 }
  0x81   :  { %v22_v38 = vpop.permute.xlu0 %21  ;;  %v77_v39 = vpop.permute.xlu1 %76 }
  0x82   :  { %v62_v52 = vmul.f32 %v49_v34, %v22_v38  ;;  %v63_v53 = vmul.f32 %v53_v35, %v22_v38  ;;  %v64_v54 = vmul.f32 %v57_v36, %v22_v38  ;;  %v65_v55 = vmul.f32 %v61_v37, %v22_v38 }
  0x83   :  { %v115_v56 = vmul.f32 %v102_v40, %v77_v39  ;;  %v116_v57 = vmul.f32 %v106_v41, %v77_v39  ;;  %v117_v58 = vmul.f32 %v110_v42, %v77_v39  ;;  %v118_v59 = vmul.f32 %v114_v43, %v77_v39 }
  0x85   :  { %v69_v60 = vpop.permute.xlu0 %68 }
  0x86   :  { %v71_v61 = vadd.f32 %v69_v60, %v62_v52  ;;  %v72_v62 = vadd.f32 %v69_v60, %v63_v53  ;;  %v73_v63 = vadd.f32 %v69_v60, %v64_v54  ;;  %v74_v0 = vadd.f32 %v69_v60, %v65_v55  ;;  %v125_v1 = vpop.permute.xlu1 %124 }
  0x87   :  { %v163_v2 = vmul.f32 %v150_v44, %v125_v1  ;;  %v164_v3 = vmul.f32 %v154_v45, %v125_v1  ;;  %v165_v4 = vmul.f32 %v158_v46, %v125_v1  ;;  %v166_v5 = vmul.f32 %v162_v47, %v125_v1 }
  0x88   :  { %v119_v6 = vadd.f32 %v115_v56, %v71_v61  ;;  %v120_v7 = vadd.f32 %v116_v57, %v72_v62  ;;  %v121_v8 = vadd.f32 %v117_v58, %v73_v63  ;;  %v122_v9 = vadd.f32 %v118_v59, %v74_v0 }
  0x8a   :  { %v167_v10 = vadd.f32 %v163_v2, %v119_v6  ;;  %v168_v11 = vadd.f32 %v164_v3, %v120_v7  ;;  %v169_v12 = vadd.f32 %v165_v4, %v121_v8  ;;  %v170_v13 = vadd.f32 %v166_v5, %v122_v9  ;;  %v173_v14 = vpop.permute.xlu0 %172 }
  0x8b   :  { %v211_v15 = vmul.f32 %v198_v48, %v173_v14  ;;  %v212_v16 = vmul.f32 %v202_v49, %v173_v14  ;;  %v213_v17 = vmul.f32 %v206_v50, %v173_v14  ;;  %v214_v18 = vmul.f32 %v210_v51, %v173_v14 }
  0x8d   :  { %v215_v19 = vadd.f32 %v211_v15, %v167_v10  ;;  %v216_v20 = vadd.f32 %v212_v16, %v168_v11  ;;  %v217_v21 = vadd.f32 %v213_v17, %v169_v12  ;;  %v218_v22 = vadd.f32 %v214_v18, %v170_v13 }
  0x8f   :  { %219 = vst [vmem:[#allocation2] sm:$0xff] %v215_v19  ;;  %220 = vst [vmem:[#allocation2 + $0x8] sm:$0xff] %v216_v20 }
  0x90   :  { %221 = vst [vmem:[#allocation2 + $0x10] sm:$0xff] %v217_v21  ;;  %222 = vst [vmem:[#allocation2 + $0x18] sm:$0xff] %v218_v22 }
  0x91   :  { %261 = shalt.err (!%p258_p4)
}
  0x92   :  { %s262_s22 = scalar_lea.hbm %s336_s3, 512 }
  0x93   :  { %p263_p5 = scmp.ne.s32.totalorder %s336_s3, %s262_s22  ;;  %p266_p6 = scmp.lt.u32.totalorder %s262_s22, %s336_s3 }
  0x95   :  { %p268_p7 = pnand %p266_p6, %p263_p5 }
  0x97   :  { %271 = shalt.err (!%p268_p7)
}
  0x98   :  { %s279_s27 = smov 256   ;;  %s280_s28 = smov 16  }
  0x99   :  { %234 = dma.vmem_to_hbm [thread:$0]  %s229_s2, 512, %s336_s3, [#allocation3], %s279_s27, %s279_s27, %s280_s28  }
  0x9a   :  { %272 = dma.done.wait [#allocation3], 512  }
  0x9b   :  { %273 = vsyncadd [#allocation3], 4294966784 }
  0x9c   :  { %238 = vsyncpa [#allocation3], 1 }

</bundles_post_ra>
